<compile_context>
chip_gen: v7x
topology: tpu7x:2x2x1
jax: 0.10.0
libtpu: 0.0.40
codegen_flags: <defaults>
</compile_context>

<pallas_src>
import functools

import jax
import jax.numpy as jnp
from jax.experimental import pallas as pl
from jax.experimental.pallas import tpu as pltpu

_LANES = 128
_SUBLANES = 8


def _round_up(x, m):
    return (x + m - 1) // m * m


def _cdiv(a, b):
    return (a + b - 1) // b


def _self_output_kernel(x_ref, res_ref, w_ref, b_ref, g_ref, beta_ref, *rest,
                        eps: float, d_valid: int, use_mask: bool,
                        cast_bf16: bool):
    if use_mask:
        mask_ref, o_ref = rest
    else:
        (o_ref,) = rest

    # ---- Linear: x @ W_t  (W_t is (in, out); plain MXU contraction) -------
    x = x_ref[...]
    if cast_bf16:
        x = x.astype(jnp.bfloat16)           # large-D fallback path only
    y = jnp.dot(x, w_ref[...], preferred_element_type=jnp.float32)
    y = y + b_ref[...]                       # bias is pre-cast to f32 (1, dp)

    # TODO(synk): dropout is identity in eval mode; training-mode dropout
    # (pltpu.prng_random_bits mask) is not implemented here.

    # ---- Residual add (f32 elementwise path) -------------------------------
    h = y + res_ref[...].astype(jnp.float32)

    # ---- LayerNorm over the valid D features -------------------------------
    # Padded feature lanes of h are exactly zero (zero-padded weight columns,
    # bias and residual), so the mean can sum over all lanes and divide by D.
    mu = jnp.sum(h, axis=-1, keepdims=True) * (1.0 / d_valid)
    centered = h - mu
    sq = centered * centered
    if use_mask:
        sq = sq * mask_ref[...]              # resident (1, dp) f32 mask
    # torch.var default is unbiased (ddof=1) -> divide by D-1.
    var = jnp.sum(sq, axis=-1, keepdims=True) * (1.0 / (d_valid - 1))
    xn = centered * jax.lax.rsqrt(var + eps)

    out = g_ref[...] * xn + beta_ref[...]    # gamma/beta pre-cast to f32 (1, dp)
    o_ref[...] = out.astype(o_ref.dtype)


def self_output(output_layer, input_tensor, weight, bias, ln_weight, ln_bias,
                *, eps=1e-5, block_rows=512):
    """output_layer, input_tensor: (B, L, D). weight: (D, D) torch-style (out, in)."""
    B, L, D = output_layer.shape
    assert input_tensor.shape == (B, L, D)
    assert weight.shape == (D, D) and bias.shape == (D,)
    assert D >= 2, "unbiased variance (ddof=1) needs at least 2 features"

    M = B * L
    act_dtype = output_layer.dtype
    itemsize = jnp.dtype(act_dtype).itemsize

    # Lane-dense feature axis: pad D up to a multiple of 128 only when needed.
    dp = _round_up(D, _LANES)
    d_padded = dp != D

    # One-time weight transpose -> (in, out): the kernel contracts the leading
    # axis of W, so no per-step transpose of the resident weight can be
    # emitted.  One-time DxD cost is negligible vs. the MxD activation traffic.
    w_t = weight.astype(act_dtype).T
    if d_padded:
        w_t = jnp.pad(w_t, ((0, dp - D), (0, dp - D)))
        bias = jnp.pad(bias, ((0, dp - D),))
        ln_weight = jnp.pad(ln_weight, ((0, dp - D),))
        ln_bias = jnp.pad(ln_bias, ((0, dp - D),))

    # Large-D fallback for VMEM-limited parts (v7x: 64 MiB physical VMEM):
    # resident f32 weight > ~20 MiB -> bf16 weight + bf16 x operand (f32 acc).
    # TODO(synk): replace with out-feature tiling (2nd grid dim) to keep f32.
    cast_bf16 = False
    w_bytes = dp * dp * jnp.dtype(w_t.dtype).itemsize
    if w_bytes > 20 * 1024 * 1024 and w_t.dtype == jnp.float32:
        w_t = w_t.astype(jnp.bfloat16)
        cast_bf16 = True
        w_bytes = dp * dp * 2

    # Activations: pad the feature axis only (never the row axis).
    x2 = output_layer.reshape(M, D)
    r2 = input_tensor.reshape(M, D)
    if d_padded:
        x2 = jnp.pad(x2, ((0, 0), (0, dp - D)))
        r2 = jnp.pad(r2, ((0, 0), (0, dp - D)))

    b2 = bias.reshape(1, dp).astype(jnp.float32)
    g2 = ln_weight.reshape(1, dp).astype(jnp.float32)
    be2 = ln_bias.reshape(1, dp).astype(jnp.float32)

    # ---- Row tile selection -------------------------------------------------
    # Big sublane-dense tiles, but keep >= 2 grid steps (one per v7x core),
    # preferably >= 4 so both cores stay pipelined.
    bm_req = max(_SUBLANES, _round_up(block_rows, _SUBLANES))
    if M > _SUBLANES:
        target_steps = 4 if M >= 4 * _SUBLANES else 2
        bm_cap = max(_SUBLANES, _round_up(_cdiv(M, target_steps), _SUBLANES))
        bm = min(bm_req, bm_cap)
    else:
        bm = _SUBLANES

    # ---- VMEM budget (cap with headroom under v7x's 64 MiB physical VMEM) ---
    def _vmem_estimate(bm_):
        return (w_bytes                          # resident weight (single copy)
                + 4 * dp * 4                     # bias/gamma/beta/mask residents
                + 2 * 2 * bm_ * dp * itemsize    # double-buffered x & residual tiles
                + 2 * bm_ * dp * itemsize        # double-buffered output tile
                + 5 * bm_ * dp * 4)              # live f32 LN temporaries (floor)

    VMEM_CAP = 48 * 1024 * 1024
    while bm > _SUBLANES and int(1.5 * _vmem_estimate(bm)) > VMEM_CAP:
        bm = max(_SUBLANES, _round_up(bm // 2, _SUBLANES))
    vmem_limit = int(min(max(1.5 * _vmem_estimate(bm), 32 * 1024 * 1024),
                         VMEM_CAP))

    grid = (_cdiv(M, bm),)   # ragged tail tile handled by Pallas (rows independent)

    # Grid-invariant operands: whole-array VMEM residents (single copy,
    # not re-DMA'd / double-buffered per grid step).
    resident = pl.BlockSpec(memory_space=pltpu.MemorySpace.VMEM)

    in_specs = [
        pl.BlockSpec((bm, dp), lambda i: (i, 0)),  # attention-output rows
        pl.BlockSpec((bm, dp), lambda i: (i, 0)),  # residual rows
        resident,                                  # weight (in, out)
        resident,                                  # bias (1, dp) f32
        resident,                                  # ln gamma (1, dp) f32
        resident,                                  # ln beta (1, dp) f32
    ]
    inputs = [x2, r2, w_t, b2, g2, be2]
    if d_padded:
        mask = (jnp.arange(dp) < D).astype(jnp.float32).reshape(1, dp)
        in_specs.append(resident)                  # valid-lane mask (1, dp) f32
        inputs.append(mask)

    out = pl.pallas_call(
        functools.partial(_self_output_kernel, eps=eps, d_valid=D,
                          use_mask=d_padded, cast_bf16=cast_bf16),
        out_shape=jax.ShapeDtypeStruct((M, dp), act_dtype),
        grid_spec=pltpu.PrefetchScalarGridSpec(
            num_scalar_prefetch=0,
            grid=grid,
            in_specs=in_specs,
            out_specs=pl.BlockSpec((bm, dp), lambda i: (i, 0)),
        ),
        compiler_params=pltpu.CompilerParams(
            # Row axis is independent -> shardable across TensorCores.
            dimension_semantics=("parallel",),
            vmem_limit_bytes=vmem_limit),
    )(*inputs)

    if d_padded:
        out = out[:, :D]
    return out.reshape(B, L, D)


def _reference(output_layer, input_tensor, weight, bias, ln_w, ln_b, eps=1e-5):
    y = jnp.einsum("bld,ed->ble", output_layer, weight) + bias
    h = y + input_tensor
    mu = jnp.mean(h, axis=-1, keepdims=True)
    var = jnp.sum((h - mu) ** 2, axis=-1, keepdims=True) / (h.shape[-1] - 1)
    return ln_w * (h - mu) / jnp.sqrt(var + eps) + ln_b


if __name__ == "__main__":
    def run_case(B, L, D, key):
        k1, k2, k3, k4 = jax.random.split(key, 4)
        output_layer = jax.random.normal(k1, (B, L, D), dtype=jnp.float32)
        input_tensor = jax.random.normal(k2, (B, L, D), dtype=jnp.float32)
        bound = 1.0 / (D ** 0.5)  # torch nn.Linear-style uniform bounds
        weight = jax.random.uniform(k3, (D, D), minval=-bound, maxval=bound,
                                    dtype=jnp.float32)  # (out, in)
        bias = jax.random.uniform(k4, (D,), minval=-bound, maxval=bound,
                                  dtype=jnp.float32)
        ln_weight = jnp.ones((D,), dtype=jnp.float32)
        ln_bias = jnp.zeros((D,), dtype=jnp.float32)

        out = self_output(output_layer, input_tensor, weight, bias,
                          ln_weight, ln_bias)
        out = jax.block_until_ready(out)

        ref = _reference(output_layer, input_tensor, weight, bias,
                         ln_weight, ln_bias)
        assert out.shape == (B, L, D)
        assert jnp.allclose(out, ref, atol=1e-3, rtol=1e-3), \
            f"mismatch vs reference (B={B}, L={L}, D={D})"

    key = jax.random.PRNGKey(0)
    k_a, k_b, k_c = jax.random.split(key, 3)
    run_case(2, 8, 32, k_a)     # module's toy config (D=32 -> padded to 128 lanes)
    run_case(2, 64, 128, k_b)   # lane-dense shape, multi-step grid, no padding
    run_case(3, 7, 128, k_c)    # ragged row count -> masked tail tile path

    print("KERNEL_OK")
</pallas_src>

<mosaic_0001>
module attributes {stable_mosaic.version = 11 : i64} {
  func.func @_self_output_kernel(%arg0: i32, %arg1: memref<8x128xf32, #tpu.memory_space<vmem>>, %arg2: memref<8x128xf32, #tpu.memory_space<vmem>>, %arg3: memref<128x128xf32, #tpu.memory_space<vmem>>, %arg4: memref<1x128xf32, #tpu.memory_space<vmem>>, %arg5: memref<1x128xf32, #tpu.memory_space<vmem>>, %arg6: memref<1x128xf32, #tpu.memory_space<vmem>>, %arg7: memref<1x128xf32, #tpu.memory_space<vmem>>, %arg8: memref<8x128xf32, #tpu.memory_space<vmem>>) attributes {dimension_semantics = [#tpu.dimension_semantics<parallel>], iteration_bounds = array<i64: 2>, scalar_prefetch = 0 : i64, scratch_operands = 0 : i64, tpu.core_type = #tpu.core_type<tc>, window_params = [{transform_indices = @transform_0, window_bounds = array<i64: 8, 128>}, {transform_indices = @transform_1, window_bounds = array<i64: 8, 128>}, {pipeline_mode = #tpu.pipeline_mode<synchronous>, transform_indices = @transform_2, window_bounds = array<i64: 128, 128>}, {pipeline_mode = #tpu.pipeline_mode<synchronous>, transform_indices = @transform_3, window_bounds = array<i64: 1, 128>}, {pipeline_mode = #tpu.pipeline_mode<synchronous>, transform_indices = @transform_4, window_bounds = array<i64: 1, 128>}, {pipeline_mode = #tpu.pipeline_mode<synchronous>, transform_indices = @transform_5, window_bounds = array<i64: 1, 128>}, {pipeline_mode = #tpu.pipeline_mode<synchronous>, transform_indices = @transform_6, window_bounds = array<i64: 1, 128>}, {transform_indices = @transform_7, window_bounds = array<i64: 8, 128>}]} {
    %c0 = arith.constant 0 : index
    %c0_0 = arith.constant 0 : index
    %0 = vector.load %arg1[%c0, %c0_0] : memref<8x128xf32, #tpu.memory_space<vmem>>, vector<8x128xf32>
    %c0_1 = arith.constant 0 : index
    %c0_2 = arith.constant 0 : index
    %1 = vector.load %arg3[%c0_1, %c0_2] : memref<128x128xf32, #tpu.memory_space<vmem>>, vector<128x128xf32>
    %cst = arith.constant dense<0.000000e+00> : vector<8x128xf32>
    %2 = tpu.matmul %0, %1, %cst {dimension_numbers = #tpu.dot_dimension_numbers<[1], [0], [0], [1], [0, 0, 1, 1], [], []>} : vector<8x128xf32>, vector<128x128xf32>, vector<8x128xf32> -> vector<8x128xf32>
    %c0_3 = arith.constant 0 : index
    %c0_4 = arith.constant 0 : index
    %3 = vector.load %arg4[%c0_3, %c0_4] : memref<1x128xf32, #tpu.memory_space<vmem>>, vector<1x128xf32>
    %4 = vector.broadcast %3 : vector<1x128xf32> to vector<8x128xf32>
    %5 = arith.addf %2, %4 : vector<8x128xf32>
    %c0_5 = arith.constant 0 : index
    %c0_6 = arith.constant 0 : index
    %6 = vector.load %arg2[%c0_5, %c0_6] : memref<8x128xf32, #tpu.memory_space<vmem>>, vector<8x128xf32>
    %7 = arith.addf %5, %6 : vector<8x128xf32>
    %cst_7 = arith.constant dense<0.000000e+00> : vector<8xf32>
    %8 = vector.multi_reduction <add>, %7, %cst_7 [1] : vector<8x128xf32> to vector<8xf32>
    %9 = vector.shape_cast %8 : vector<8xf32> to vector<8x1xf32>
    %cst_8 = arith.constant 3.125000e-02 : f32
    %10 = vector.broadcast %cst_8 : f32 to vector<8x1xf32>
    %11 = arith.mulf %9, %10 : vector<8x1xf32>
    %12 = vector.broadcast %11 : vector<8x1xf32> to vector<8x128xf32>
    %13 = arith.subf %7, %12 : vector<8x128xf32>
    %14 = arith.mulf %13, %13 : vector<8x128xf32>
    %c0_9 = arith.constant 0 : index
    %c0_10 = arith.constant 0 : index
    %15 = vector.load %arg7[%c0_9, %c0_10] : memref<1x128xf32, #tpu.memory_space<vmem>>, vector<1x128xf32>
    %16 = vector.broadcast %15 : vector<1x128xf32> to vector<8x128xf32>
    %17 = arith.mulf %14, %16 : vector<8x128xf32>
    %cst_11 = arith.constant dense<0.000000e+00> : vector<8xf32>
    %18 = vector.multi_reduction <add>, %17, %cst_11 [1] : vector<8x128xf32> to vector<8xf32>
    %19 = vector.shape_cast %18 : vector<8xf32> to vector<8x1xf32>
    %cst_12 = arith.constant 0.0322580636 : f32
    %20 = vector.broadcast %cst_12 : f32 to vector<8x1xf32>
    %21 = arith.mulf %19, %20 : vector<8x1xf32>
    %cst_13 = arith.constant 9.99999974E-6 : f32
    %22 = vector.broadcast %cst_13 : f32 to vector<8x1xf32>
    %23 = arith.addf %21, %22 : vector<8x1xf32>
    %24 = math.rsqrt %23 : vector<8x1xf32>
    %25 = vector.broadcast %24 : vector<8x1xf32> to vector<8x128xf32>
    %26 = arith.mulf %13, %25 : vector<8x128xf32>
    %c0_14 = arith.constant 0 : index
    %c0_15 = arith.constant 0 : index
    %27 = vector.load %arg5[%c0_14, %c0_15] : memref<1x128xf32, #tpu.memory_space<vmem>>, vector<1x128xf32>
    %28 = vector.broadcast %27 : vector<1x128xf32> to vector<8x128xf32>
    %29 = arith.mulf %28, %26 : vector<8x128xf32>
    %c0_16 = arith.constant 0 : index
    %c0_17 = arith.constant 0 : index
    %30 = vector.load %arg6[%c0_16, %c0_17] : memref<1x128xf32, #tpu.memory_space<vmem>>, vector<1x128xf32>
    %31 = vector.broadcast %30 : vector<1x128xf32> to vector<8x128xf32>
    %32 = arith.addf %29, %31 : vector<8x128xf32>
    %c0_18 = arith.constant 0 : index
    %c0_19 = arith.constant 0 : index
    %33 = vector.load %arg8[%c0_18, %c0_19] : memref<8x128xf32, #tpu.memory_space<vmem>>, vector<8x128xf32>
    tpu.vector_store %arg8[%c0_18, %c0_19], %32 {strides = array<i32>} : memref<8x128xf32, #tpu.memory_space<vmem>>, vector<8x128xf32>,
    return
  }
  func.func @transform_0(%arg0: i32) -> (i32, i32) {
    %c0_i32 = arith.constant 0 : i32
    %c0_i32_0 = arith.constant 0 : i32
    return %arg0, %c0_i32 : i32, i32
  }
  func.func @transform_1(%arg0: i32) -> (i32, i32) {
    %c0_i32 = arith.constant 0 : i32
    %c0_i32_0 = arith.constant 0 : i32
    return %arg0, %c0_i32 : i32, i32
  }
  func.func @transform_2(%arg0: i32) -> (i32, i32) {
    %c0_i32 = arith.constant 0 : i32
    %c0_i32_0 = arith.constant 0 : i32
    %c0_i32_1 = arith.constant 0 : i32
    return %c0_i32, %c0_i32_0 : i32, i32
  }
  func.func @transform_3(%arg0: i32) -> (i32, i32) {
    %c0_i32 = arith.constant 0 : i32
    %c0_i32_0 = arith.constant 0 : i32
    %c0_i32_1 = arith.constant 0 : i32
    return %c0_i32, %c0_i32_0 : i32, i32
  }
  func.func @transform_4(%arg0: i32) -> (i32, i32) {
    %c0_i32 = arith.constant 0 : i32
    %c0_i32_0 = arith.constant 0 : i32
    %c0_i32_1 = arith.constant 0 : i32
    return %c0_i32, %c0_i32_0 : i32, i32
  }
  func.func @transform_5(%arg0: i32) -> (i32, i32) {
    %c0_i32 = arith.constant 0 : i32
    %c0_i32_0 = arith.constant 0 : i32
    %c0_i32_1 = arith.constant 0 : i32
    return %c0_i32, %c0_i32_0 : i32, i32
  }
  func.func @transform_6(%arg0: i32) -> (i32, i32) {
    %c0_i32 = arith.constant 0 : i32
    %c0_i32_0 = arith.constant 0 : i32
    %c0_i32_1 = arith.constant 0 : i32
    return %c0_i32, %c0_i32_0 : i32, i32
  }
  func.func @transform_7(%arg0: i32) -> (i32, i32) {
    %c0_i32 = arith.constant 0 : i32
    %c0_i32_0 = arith.constant 0 : i32
    return %arg0, %c0_i32 : i32, i32
  }
}

</mosaic_0001>

<bundles_post_ra>
// kernel: tpu_custom_call.1
= control target key start
LH: loop header
LB: loop body
LE: loop exit
PB: predicated region body
PF: predicated region fallthrough
CT: control target
= control target key end

     0   :  { %s1223_s0 = inlined_call_operand.hbm [shape: f32[16,128], index: 0, kind: input, shape index: {}]   ;;  %s1224_s1 = inlined_call_operand.hbm [shape: f32[16,128], index: 1, kind: input, shape index: {}]   ;;  %s1225_s2 = inlined_call_operand.hbm [shape: f32[128,128], index: 2, kind: input, shape index: {}]   ;;  %s1226_s3 = inlined_call_operand.vmem [shape: f32[1,128], index: 3, kind: input, shape index: {}]   ;;  %s1227_s4 = inlined_call_operand.vmem [shape: f32[1,128], index: 4, kind: input, shape index: {}]   ;;  %s1228_s5 = inlined_call_operand.vmem [shape: f32[1,128], index: 5, kind: input, shape index: {}]   ;;  %s1229_s6 = inlined_call_operand.vmem [shape: f32[1,128], index: 6, kind: input, shape index: {}]   ;;  %s1230_s7 = inlined_call_operand.hbm [shape: f32[16,128], index: 7, kind: output, shape index: {}]  }
   0x1   :  { %1238 = sst [smem:[#allocation16_spill]] %s1225_s2 }
   0x2   :  { %12 = vsyncpa [#allocation3], 0 }
   0x3   :  { %14 = vsyncpa [#allocation3 + $0x1], 0 }
   0x4   :  { %15 = vsyncpa [#allocation6], 0 }
   0x5   :  { %17 = vsyncpa [#allocation6 + $0x1], 0 }
   0x6   :  { %18 = vsyncpa [#allocation4], 0 }
   0x7   :  { %20 = vsyncpa [#allocation4 + $0x1], 0  ;;  %s972_s24 = smov 0   ;;  %s974_s25 = smov 0  }
   0x8   :  { %s976_s26 = smov 0   ;;  %s978_s27 = smov 0  }
   0x9 LB: > { %1239 = sst [smem:[#allocation13_spill]] %s917_s26  ;;  %s993_s28 = sadd.s32 4294967295, %s921_s27   ;;  %s921_s27 = sphi %s978_s27, %s1257_s27   ;;  %s917_s26 = sphi %s976_s26, %s1259_s26   ;;  %s913_s25 = sphi %s974_s25, %s1261_s25   ;;  %s909_s24 = sphi %s972_s24, %s1260_s24  }
   0xa   : > { %s593_s29 = sadd.s32 4294967294, %s921_s27   ;;  %p46_p0 = scmp.ne.s32.totalorder %s913_s25, %s909_s24 }
   0xb   : > { %p1231_p1 = scmp.eq.s32.totalorder %s993_s28, 0  ;;  %p207_p3 = scmp.eq.s32.totalorder %s593_s29, 1 }
   0xc   : > { %p594_p5 = scmp.ge.s32.totalorder %s921_s27, 1  ;;  %p214_p7 = scmp.lt.s32.totalorder %s921_s27, 3 }
   0xd   : > { %p1002_p4 = por %p1231_p1, %p46_p0  ;;  %p1007_p6 = por %p207_p3, %p46_p0 }
   0xe   : > { %p1012_p8 = pnand %p594_p5, %p214_p7  ;;  %s923_s10 = smov [#allocation7]  }
   0xf   : > { %s1240_s30 = scalar_select %p1002_p4, 1, 0 }
  0x10   : > { %s1241_s8 = scalar_select %p1007_p6, 1, 0 }
  0x11   : > { %s1242_s9 = scalar_select %p1012_p8, 1, 0 }
  0x12   : > { %s226_s11 = sshll.u32 %s923_s10, 4  ;;  %p700_p9 = pneg %p1012_p8  ;;  %s1016_s11 = int_to_ptr.vmem [resolvable:$true] %s226_s11 }
  0x13   : > { %s1028_s13 = sadd.s32 1, %s921_s27   ;;  %s33_s14 = sadd.s32 1, %s917_s26 }
  0x14   : > { %p1023_p11 = pnand %p700_p9, %p1231_p1  ;;  %1244 = sst [smem:[#allocation14_spill]] %s1028_s13 }
  0x15   : > { %s30_s15 = ssub.s32 %s921_s27, %s1028_s13  ;;  %s1245_s2 = sld [smem:[#allocation16_spill]] }
  0x16   : > { %p761_p13 = pneg %p1023_p11 }
  0x1b   : > { %s759_s18 = scalar_lea.hbm %s1245_s2, 2048 }
  0x1c   : > { %p760_p12 = scmp.ne.s32.totalorder %s1245_s2, %s759_s18  ;;  %p766_p5 = scmp.lt.u32.totalorder %s759_s18, %s1245_s2 }
  0x1e   : > { %p762_p0 = pnand %p761_p13, %p760_p12 }
  0x20   : > { %p763_p3 = pneg %p762_p0 }
  0x22   : > { %p768_p7 = pnand %p766_p5, %p763_p3 }
  0x24   : > { %771 = shalt.err (!%p768_p7)
}
  0x25   : > { %s772_s23 = scalar_lea.vmem %s1016_s11, 2048  ;;  %p780_p2 = scmp.lt.s32.totalorder %s1016_s11, %s1016_s11 }
  0x26   : > { %p773_p9 = scmp.ne.s32.totalorder %s1016_s11, %s772_s23  ;;  %p781_p6 = scmp.lt.s32.totalorder %s772_s23, %s772_s23 }
  0x28   : > { %p775_p10 = pnand %p773_p9, %p761_p13  ;;  %p782_p4 = por %p781_p6, %p780_p2 }
  0x2a   : > { %p776_p1 = pneg %p775_p10 }
  0x2c   : > { %p783_p8 = pnand %p782_p4, %p776_p1 }
  0x2e   : > { %786 = shalt.err (!%p783_p8)
}
  0x2f   : > { %s924_s29 = smov 128   ;;  %s925_s10 = smov 8  }
  0x30   : > { %703 = dma.hbm_to_vmem [thread:$0]  (!%p1023_p11), %s1245_s2, 2048, %s1016_s11, [#allocation6], %s924_s29, %s924_s29, %s925_s10  }
  0x31   : > { %p31_p2 = scmp.eq.s32.totalorder %s30_s15, 0  ;;  %p40_p1 = scmp.ne.s32.totalorder %s917_s26, %s913_s25 }
  0x32   : > { %p41_p4 = scmp.eq.s32.totalorder %s921_s27, 0  ;;  %p716_p6 = scmp.lt.s32.totalorder %s921_s27, 2 }
  0x33   : > { %s1059_s18 = scalar_select %p31_p2, %s917_s26, %s33_s14  }
  0x34   : > { %p42_p8 = por %p41_p4, %p40_p1  ;;  %p1247_p10 = scmp.eq.s32.totalorder %s993_s28, 1 }
  0x35   : > { %1246 = sst [smem:[#allocation15_spill]] %s1059_s18  ;;  %s252_s20 = sand.u32 1, %s917_s26  }
  0x36   : > { %p1063_p12 = por %p1247_p10, %p40_p1  ;;  %s598_s21 = sshll.u32 %s921_s27, 7 }
  0x37   : > { %s1069_s22 = sshll.u32 %s252_s20, 3  ;;  %s1074_s11 = scalar_lea.hbm %s1223_s0, %s598_s21 }
  0x38   : > { %s1248_s19 = scalar_select %p1063_p12, 1, 0 }
  0x39   : > { %s256_s14 = scalar_lea.vmem [#allocation2], %s1069_s22  ;;  %p1077_p11 = pnand %p716_p6, %p42_p8 }
  0x3a   : > { %s263_s15 = sshll.u32 %s256_s14, 4  ;;  %s1086_s17 = scalar_lea.hbm %s1224_s1, %s598_s21  ;;  %s1081_s15 = int_to_ptr.vmem [resolvable:$true] %s263_s15 }
  0x3b   : > { %s253_s12 = scalar_lea.sflag [#allocation3], %s252_s20  ;;  %s787_s23 = scalar_lea.hbm %s1074_s11, 128 }
  0x3c   : > { %p788_p13 = scmp.ne.s32.totalorder %s1074_s11, %s787_s23  ;;  %p789_p0 = pneg %p1077_p11 }
  0x3d   : > { %s792_s18 = scalar_lea.hbm %s1223_s0, 256  ;;  %p793_p7 = scmp.lt.u32.totalorder %s1074_s11, %s1223_s0 }
  0x3e   : > { %p790_p3 = pnand %p789_p0, %p788_p13  ;;  %p794_p9 = scmp.lt.u32.totalorder %s792_s18, %s787_s23 }
  0x3f   : > { %p796_p1 = scmp.lt.u32.totalorder %s787_s23, %s1074_s11 }
  0x40   : > { %p791_p5 = pneg %p790_p3  ;;  %p795_p2 = por %p794_p9, %p793_p7 }
  0x42   : > { %p797_p4 = por %p796_p1, %p795_p2 }
  0x44   : > { %p798_p6 = pnand %p797_p4, %p791_p5 }
  0x46   : > { %801 = shalt.err (!%p798_p6)
}
  0x47   : > { %s802_s20 = scalar_lea.vmem %s1081_s15, 128  ;;  %s926_s2 = smov [#allocation2]  }
  0x48   : > { %p803_p8 = scmp.ne.s32.totalorder %s1081_s15, %s802_s20  ;;  %s807_s21 = sshll.u32 %s926_s2, 4  ;;  %s808_s21 = int_to_ptr.vmem [resolvable:$false] %s807_s21 }
  0x49   : > { %s809_s26 = scalar_lea.vmem %s808_s21, 256  ;;  %p810_p3 = scmp.lt.s32.totalorder %s1081_s15, %s808_s21 }
  0x4a   : > { %p805_p10 = pnand %p803_p8, %p789_p0  ;;  %p811_p7 = scmp.lt.s32.totalorder %s809_s26, %s802_s20 }
  0x4c   : > { %p806_p13 = pneg %p805_p10  ;;  %p812_p9 = por %p811_p7, %p810_p3 }
  0x4e   : > { %p813_p2 = pnand %p812_p9, %p806_p13 }
  0x50   : > { %816 = shalt.err (!%p813_p2)
}
  0x51   : > { %707 = dma.hbm_to_vmem [thread:$0]  (!%p1077_p11), %s1074_s11, 128, %s1081_s15, %s253_s12  }
  0x52   : > { %s270_s13 = sand.u32 1, %s921_s27   ;;  %s274_s18 = scalar_lea.vmem [#allocation5], %s1069_s22 }
  0x53   : > { %s281_s10 = sshll.u32 %s274_s18, 4  ;;  %s271_s16 = scalar_lea.sflag [#allocation6], %s270_s13  ;;  %s282_s10 = int_to_ptr.vmem [resolvable:$true] %s281_s10 }
  0x54   : > { %s817_s23 = scalar_lea.hbm %s1086_s17, 128  ;;  %s822_s2 = scalar_lea.hbm %s1224_s1, 256 }
  0x55   : > { %p818_p5 = scmp.ne.s32.totalorder %s1086_s17, %s817_s23  ;;  %p823_p6 = scmp.lt.u32.totalorder %s1086_s17, %s1224_s1 }
  0x56   : > { %p824_p8 = scmp.lt.u32.totalorder %s822_s2, %s817_s23  ;;  %p826_p13 = scmp.lt.u32.totalorder %s817_s23, %s1086_s17 }
  0x57   : > { %p820_p1 = pnand %p818_p5, %p789_p0 }
  0x58   : > { %p825_p10 = por %p824_p8, %p823_p6 }
  0x59   : > { %p821_p4 = pneg %p820_p1 }
  0x5a   : > { %p827_p3 = por %p826_p13, %p825_p10 }
  0x5c   : > { %p828_p7 = pnand %p827_p3, %p821_p4 }
  0x5e   : > { %831 = shalt.err (!%p828_p7)
}
  0x5f   : > { %s832_s22 = scalar_lea.vmem %s282_s10, 128  ;;  %s927_s11 = smov [#allocation5]  }
  0x60   : > { %p833_p9 = scmp.ne.s32.totalorder %s282_s10, %s832_s22  ;;  %s837_s15 = sshll.u32 %s927_s11, 4  ;;  %s838_s15 = int_to_ptr.vmem [resolvable:$false] %s837_s15 }
  0x61   : > { %s839_s12 = scalar_lea.vmem %s838_s15, 256  ;;  %p840_p1 = scmp.lt.s32.totalorder %s282_s10, %s838_s15 }
  0x62   : > { %p835_p2 = pnand %p833_p9, %p789_p0  ;;  %p841_p12 = scmp.lt.s32.totalorder %s839_s12, %s832_s22 }
  0x64   : > { %p836_p5 = pneg %p835_p2  ;;  %p842_p6 = por %p841_p12, %p840_p1 }
  0x66   : > { %p843_p8 = pnand %p842_p6, %p836_p5 }
  0x68   : > { %846 = shalt.err (!%p843_p8)
}
  0x69   : > { %710 = dma.hbm_to_vmem [thread:$0]  (!%p1077_p11), %s1086_s17, 128, %s282_s10, %s271_s16  }
  0x6a   : > { %p1250_p4 = scmp.ne.s32.totalorder %s1242_s9, 0 }
  0x6b   : > { %s1137_s13 = sand.u32 (!%p1250_p4), 1, %s913_s25   ;;  %p1251_p12 = scmp.ne.s32.totalorder (!%p1250_p4), %s1240_s30, 0 }
  0x6c   : > { %290 = sbr.rel (%p1250_p4) target bundleno = 699 (0x2bb), region = 48  ;;  %s1140_s18 = sshll.u32 (!%p1250_p4), %s1137_s13, 3 }
  0x6d   : > { %s293_s23 = scalar_lea.sflag (!%p1250_p4), [#allocation3], %s1137_s13  ;;  %s296_s14 = scalar_lea.vmem (!%p1250_p4), [#allocation2], %s1140_s18 }
  0x73   : > { %892 = dma.done.wait (%p1251_p12), %s293_s23, 128  }
  0x74   : > { %894 = vsyncadd (%p1251_p12), %s293_s23, 4294967168  ;;  %s301_s9 = sand.u32 1, %s993_s28   ;;  %s305_s17 = scalar_lea.vmem [#allocation5], %s1140_s18 }
  0x75   : > { %s302_s29 = scalar_lea.sflag [#allocation6], %s301_s9 }
  0x76   : > { %896 = dma.done.wait (%p1251_p12), %s302_s29, 128  }
  0x77   : > { %898 = vsyncadd (%p1251_p12), %s302_s29, 4294967168  ;;  %p1252_p11 = scmp.eq.s32.totalorder %s993_s28, 0 }
  0x79   : > { %900 = dma.done.wait (%p1252_p11), [#allocation6], 2048   ;;  %p1253_p0 = pmov %p1252_p11 }
  0x7a   : > { %v928_v0 = vmov 0.0|0.0   ;;  %vm929_vm0 = vmmov 0   ;;  %v930_v1 = vmov 0.0   ;;  %v346_v2 = vld [vmem:[#allocation7] sm:$0xff]  ;;  %v347_v3 = vld [vmem:[#allocation7 + $0x8] sm:$0xff]  ;;  %v348_v4 = vld [vmem:[#allocation7 + $0x10] sm:$0xff] }
  0x7b   : > { %902 = vsyncadd (%p1253_p0), [#allocation6], 4294965248  ;;  %666 = vmatprep.subr.bf16.mxu0 %v928_v0  ;;  %663 = vmatprep.mubr.msk.f32.mxu0 %vm929_vm0, %v930_v1  ;;  %v667_v5 = vpack.c.bf16 %v347_v3, %v346_v2  ;;  %v349_v6 = vld [vmem:[#allocation7 + $0x18] sm:$0xff]  ;;  %v350_v8 = vld [vmem:[#allocation7 + $0x20] sm:$0xff]  ;;  %s611_s11 = sshll.u32 %s993_s28, 7  ;;  %s344_s15 = scalar_lea.vmem [#allocation8], %s1140_s18 }
  0x7c   : > { %v670_v7 = vpack.c.bf16 %v349_v6, %v348_v4  ;;  %v351_v9 = vld [vmem:[#allocation7 + $0x28] sm:$0xff]  ;;  %v352_v11 = vld [vmem:[#allocation7 + $0x30] sm:$0xff]  ;;  %v353_v12 = vld [vmem:[#allocation7 + $0x38] sm:$0xff]  ;;  %s491_s12 = sshll.u32 %s344_s15, 4  ;;  %s1179_s9 = scalar_lea.hbm %s1230_s7, %s611_s11  ;;  %s1181_s12 = int_to_ptr.vmem [resolvable:$true] %s491_s12 }
  0x7d   : > { %668 = vmatpush3.bf16.msra.mxu0 %v667_v5  ;;  %v673_v10 = vpack.c.bf16 %v351_v9, %v350_v8  ;;  %v676_v13 = vpack.c.bf16 %v353_v12, %v352_v11  ;;  %v354_v14 = vld [vmem:[#allocation7 + $0x40] sm:$0xff]  ;;  %v355_v15 = vld [vmem:[#allocation7 + $0x48] sm:$0xff]  ;;  %v356_v17 = vld [vmem:[#allocation7 + $0x50] sm:$0xff]  ;;  %s478_s29 = scalar_lea.sflag [#allocation4], %s1137_s13  ;;  %p1254_p13 = scmp.ne.s32.totalorder %s1248_s19, 0 }
  0x7e   : > { %669 = vmatprep.subr.bf16.mxu0 %v928_v0  ;;  %v679_v16 = vpack.c.bf16 %v355_v15, %v354_v14  ;;  %v357_v18 = vld [vmem:[#allocation7 + $0x58] sm:$0xff]  ;;  %v358_v20 = vld [vmem:[#allocation7 + $0x60] sm:$0xff]  ;;  %v359_v21 = vld [vmem:[#allocation7 + $0x68] sm:$0xff]  ;;  %s931_s28 = smov [#allocation8]  }
  0x7f   : > { %v682_v19 = vpack.c.bf16 %v357_v18, %v356_v17  ;;  %v685_v22 = vpack.c.bf16 %v359_v21, %v358_v20  ;;  %v360_v23 = vld [vmem:[#allocation7 + $0x70] sm:$0xff]  ;;  %v361_v24 = vld [vmem:[#allocation7 + $0x78] sm:$0xff]  ;;  %v345_v26 = vld [vmem:[%s296_s14] sm:$0xff]  ;;  %s851_s18 = sshll.u32 %s931_s28, 4  ;;  %s852_s18 = int_to_ptr.vmem [resolvable:$false] %s851_s18 }
  0x80   : > { %v688_v25 = vpack.c.bf16 %v361_v24, %v360_v23  ;;  %v606_v27 = vld [vmem:[%s1226_s3] ss:$0 sm:$0xff]  ;;  %v439_v29 = vld [vmem:[%s305_s17] sm:$0xff]  ;;  %s847_s17 = scalar_lea.vmem %s1181_s12, 128  ;;  %s853_s30 = scalar_lea.vmem %s852_s18, 256 }
  0x81   : > { %671 = vmatpush3.bf16.msra.mxu0 %v670_v7  ;;  %v607_v36 = vld [vmem:[%s1229_s6] ss:$0 sm:$0xff]  ;;  %p848_p10 = scmp.ne.s32.totalorder %s1181_s12, %s847_s17  ;;  %p854_p9 = scmp.lt.s32.totalorder %s1181_s12, %s852_s18 }
  0x82   : > { %672 = vmatprep.subr.bf16.mxu0 %v928_v0  ;;  %v608_v43 = vld [vmem:[%s1227_s4] ss:$0 sm:$0xff]  ;;  %p855_p2 = scmp.lt.s32.totalorder %s853_s30, %s847_s17 }
  0x83   : > { %v609_v45 = vld [vmem:[%s1228_s5] ss:$0 sm:$0xff]  ;;  %p849_p3 = pnand %p848_p10, %p1254_p13 }
  0x84   : > { %p856_p5 = por %p855_p2, %p854_p9 }
  0x85   : > { %674 = vmatpush3.bf16.msra.mxu0 %v673_v10  ;;  %p850_p7 = pneg %p849_p3 }
  0x86   : > { %675 = vmatprep.subr.bf16.mxu0 %v928_v0 }
  0x87   : > { %p857_p1 = pnand %p856_p5, %p850_p7 }
  0x89   : > { %677 = vmatpush3.bf16.msra.mxu0 %v676_v13 }
  0x8a   : > { %678 = vmatprep.subr.bf16.mxu0 %v928_v0 }
  0x8d   : > { %680 = vmatpush3.bf16.msra.mxu0 %v679_v16 }
  0x8e   : > { %681 = vmatprep.subr.bf16.mxu0 %v928_v0 }
  0x91   : > { %683 = vmatpush3.bf16.msra.mxu0 %v682_v19 }
  0x92   : > { %684 = vmatprep.subr.bf16.mxu0 %v928_v0 }
  0x95   : > { %686 = vmatpush3.bf16.msra.mxu0 %v685_v22 }
  0x96   : > { %687 = vmatprep.subr.bf16.mxu0 %v928_v0 }
  0x99   : > { %689 = vmatpush3.bf16.msra.mxu0 %v688_v25 }
  0x9c   : > { %664 = vmatmul.mubr.f32.vlgmr.msra.gmra.mrb[0].mxu0 %v345_v26 }
 0x16f   : > { %v435_v28 = vpop.f32.mrb[0].mxu0 }
 0x170   : > { %v436_v30 = vadd.f32 %v606_v27, %v435_v28  ;;  %v665_v31 = vpop.f32.mrb[1].mxu0 }
 0x172   : > { %v440_v32 = vadd.f32 %v439_v29, %v436_v30 }
 0x174   : > { %441 = vadd.xlane.f32.xlu0 %v440_v32 }
 0x201   : > { %v442_v33 = vpop.xlane.xlu0 %441 }
 0x202   : > { %v443_v34 = vmul.f32 0.03125, %v442_v33 }
 0x204   : > { %v444_v35 = vsub.f32 %v440_v32, %v443_v34 }
 0x206   : > { %v445_v37 = vmul.f32 %v444_v35, %v444_v35 }
 0x208   : > { %v453_v38 = vmul.f32 %v607_v36, %v445_v37 }
 0x20a   : > { %454 = vadd.xlane.f32.xlu0 %v453_v38 }
 0x297   : > { %v455_v39 = vpop.xlane.xlu0 %454 }
 0x298   : > { %v456_v40 = vmul.f32 0.032258064, %v455_v39 }
 0x29a   : > { %v457_v41 = vadd.f32 1e-05, %v456_v40 }
 0x29c   : > { %757 = vrsqrt.f32 %v457_v41 }
 0x2a6   : > { %v758_v42 = vpop.eup %757 }
 0x2a7   : > { %v459_v44 = vmul.f32 %v758_v42, %v444_v35 }
 0x2a9   : > { %v467_v46 = vmul.f32 %v608_v43, %v459_v44 }
 0x2ab   : > { %v475_v47 = vadd.f32 %v609_v45, %v467_v46 }
 0x2ad   : > { %476 = vst [vmem:[%s344_s15] sm:$0xff] %v475_v47 }
 0x2ae   : > { %860 = shalt.err (!%p857_p1)
}
 0x2af   : > { %s861_s13 = scalar_lea.hbm %s1179_s9, 128  ;;  %s865_s20 = scalar_lea.hbm %s1230_s7, 256 }
 0x2b0   : > { %p862_p6 = scmp.ne.s32.totalorder %s1179_s9, %s861_s13  ;;  %p866_p12 = scmp.lt.u32.totalorder %s1179_s9, %s1230_s7 }
 0x2b1   : > { %p867_p11 = scmp.lt.u32.totalorder %s865_s20, %s861_s13  ;;  %p869_p10 = scmp.lt.u32.totalorder %s861_s13, %s1179_s9 }
 0x2b2   : > { %p863_p8 = pnand %p862_p6, %p1254_p13 }
 0x2b3   : > { %p868_p0 = por %p867_p11, %p866_p12 }
 0x2b4   : > { %p864_p4 = pneg %p863_p8 }
 0x2b5   : > { %p870_p3 = por %p869_p10, %p868_p0 }
 0x2b7   : > { %p871_p7 = pnand %p870_p3, %p864_p4 }
 0x2b9   : > { %874 = shalt.err (!%p871_p7)
}
 0x2ba   : > { %698 = dma.vmem_to_hbm [thread:$0]  (%p1254_p13), %s1181_s12, 128, %s1179_s9, %s478_s29  }
 0x2bb PF: > { %s503_s26 = sand.u32 1, %s909_s24   ;;  %p1255_p9 = scmp.ne.s32.totalorder %s1241_s8, 0 }
 0x2bc   : > { %p1256_p2 = scmp.ge.s32.totalorder %s921_s27, 2  ;;  %s504_s22 = scalar_lea.sflag [#allocation4], %s503_s26 }
 0x2be   : > { %p712_p5 = pnand %p1256_p2, %p1255_p9 }
 0x2c0   : > { %904 = dma.done.wait (!%p712_p5), %s504_s22, 128  }
 0x2c1   : > { %906 = vsyncadd (!%p712_p5), %s504_s22, 4294967168  ;;  %s1257_s27 = sld [smem:[#allocation14_spill]]  ;;  %s1258_s11 = sld [smem:[#allocation13_spill]] }
 0x2c2   : > { %s1259_s26 = sld [smem:[#allocation15_spill]]  ;;  %s1260_s24 = smov %s913_s25 }
 0x2c7   : > { %p23_p1 = scmp.ge.s32.totalorder %s1257_s27, 4   ;;  %s1261_s25 = smov %s1258_s11 }
 0x2c9   :  { %25 = sbr.rel (!%p23_p1) target bundleno = 9 (0x9), region = 110 }
 0x2d0   :  { %509 = vsyncpa [#allocation3], 1 }
 0x2d1   :  { %511 = vsyncpa [#allocation3 + $0x1], 1 }
 0x2d2   :  { %512 = vsyncpa [#allocation6], 1 }
 0x2d3   :  { %514 = vsyncpa [#allocation6 + $0x1], 1 }
 0x2d4   :  { %515 = vsyncpa [#allocation4], 1 }
 0x2d5   :  { %517 = vsyncpa [#allocation4 + $0x1], 1 }

</bundles_post_ra>
